<compile_context>
chip_gen: v6e
topology: v6e:2x2x1
jax: 0.10.0
libtpu: 0.0.40
codegen_flags: <defaults>
</compile_context>

<pallas_src>
import jax
import jax.numpy as jnp
from jax.experimental import pallas as pl
from jax.experimental.pallas import tpu as pltpu

LANE = 128      # lane width (last-dim tiling granularity)
SUBLANE = 8     # sublane width (second-to-last dim granularity)


def _round_up(n, m):
    return ((n + m - 1) // m) * m


def _pad2(a, rows, cols):
    r, c = a.shape
    return jnp.pad(a, ((0, rows - r), (0, cols - c)))


# --------------------- kernel 1: one-shot affine fold ----------------------- #
# Runs once at param-prep time on lane-padded weights (all resident in VMEM).
def fold_kernel(w1_ref, b1_ref, w2_ref, b2_ref, w3_ref, b3_ref, wo_ref, bo_ref):
    w12 = jnp.dot(w1_ref[...], w2_ref[...], preferred_element_type=jnp.float32)
    wo_ref[...] = jnp.dot(w12, w3_ref[...], preferred_element_type=jnp.float32)
    b12 = jnp.dot(b1_ref[...], w2_ref[...],
                  preferred_element_type=jnp.float32) + b2_ref[...]
    bo_ref[...] = jnp.dot(b12, w3_ref[...],
                          preferred_element_type=jnp.float32) + b3_ref[...]


# --------------------- kernel 2: batch-tiled affine ------------------------- #
def affine_kernel(x_ref, w_ref, b_ref, o_ref):
    # Single MXU pass: [tb, in] @ [in, out_pad] with f32 accumulation.
    acc = jnp.dot(x_ref[...], w_ref[...], preferred_element_type=jnp.float32)
    # Bias add kept in f32 (v5e has no bf16 VALU); single cast on store.
    o_ref[...] = (acc + b_ref[...]).astype(o_ref.dtype)


# ------------------------------ param prep ---------------------------------- #
def prepare_params(params):
    """Zero-pad all layer dims to lane multiples and fold the 3 affine layers
    into one (W_fold [in, out_pad], b_fold [1, out_pad]) inside a Pallas kernel.

    Zero padding only adds rows/columns that contribute exactly 0, so the fold
    is numerically the same (up to fp reassociation) as the unfused forward.
    """
    w1, b1, w2, b2, w3, b3 = (jnp.asarray(p, jnp.float32) for p in params)
    in_dim = w1.shape[0]
    h1, h2, out_dim = w1.shape[1], w2.shape[1], w3.shape[1]
    h1p = _round_up(h1, LANE)
    h2p = _round_up(h2, LANE)
    out_pad = _round_up(out_dim, LANE)

    # Pure layout plumbing (zero pad); biases padded to 8 sublanes so the fold
    # kernel's bias matmuls use well-shaped [8, N] operands.
    w1p = _pad2(w1, in_dim, h1p)
    b1p = _pad2(b1, SUBLANE, h1p)
    w2p = _pad2(w2, h1p, h2p)
    b2p = _pad2(b2, SUBLANE, h2p)
    w3p = _pad2(w3, h2p, out_pad)
    b3p = _pad2(b3, SUBLANE, out_pad)

    W_fold, b_fold8 = pl.pallas_call(
        fold_kernel,
        out_shape=(jax.ShapeDtypeStruct((in_dim, out_pad), jnp.float32),
                   jax.ShapeDtypeStruct((SUBLANE, out_pad), jnp.float32)),
    )(w1p, b1p, w2p, b2p, w3p, b3p)

    # Only row 0 of the padded bias is real (rows 1..7 are exactly zero).
    return W_fold, b_fold8[0:1, :], out_dim


# ------------------------------ batch tiling --------------------------------- #
def _choose_batch_tile(B, in_dim, out_pad, tb_max=256,
                       vmem_budget=16 * 1024 * 1024):
    """Batch tile: multiple of 8, <= tb_max, fits a v7x-safe VMEM budget."""
    if B <= tb_max:
        return B  # single / full-dim block is always legal
    # Resident folded weight + bias (worst case: double-buffered).
    resident = 2 * (in_dim * out_pad + out_pad) * 4
    # Per-row bytes of double-buffered x tile + out tile (f32).
    per_row = 2 * (in_dim + out_pad) * 4
    tb_fit = max(SUBLANE, ((vmem_budget - resident) // per_row)
                 // SUBLANE * SUBLANE)
    return int(min(tb_max, tb_fit))


# -------------------------------- forward ------------------------------------ #
def affine_forward(x, W_fold, b_fold, out_dim, *, tb_max=256):
    """y = x @ W_fold + b_fold with lane-padded output, sliced back to out_dim."""
    B, in_dim = x.shape
    out_pad = W_fold.shape[1]
    out_dtype = x.dtype

    tb = _choose_batch_tile(B, in_dim, out_pad, tb_max=tb_max)
    grid = (pl.cdiv(B, tb),)

    cost = pl.CostEstimate(
        flops=2 * B * in_dim * out_pad,
        transcendentals=0,
        bytes_accessed=(x.size * x.dtype.itemsize
                        + W_fold.size * 4 + b_fold.size * 4
                        + B * out_pad * jnp.dtype(out_dtype).itemsize),
    )

    out_padded = pl.pallas_call(
        affine_kernel,
        out_shape=jax.ShapeDtypeStruct((B, out_pad), out_dtype),
        grid_spec=pl.GridSpec(
            grid=grid,
            in_specs=[
                pl.BlockSpec((tb, in_dim), lambda i: (i, 0)),        # x tile
                pl.BlockSpec((in_dim, out_pad), lambda i: (0, 0)),   # folded W
                pl.BlockSpec((1, out_pad), lambda i: (0, 0)),        # folded b
            ],
            out_specs=pl.BlockSpec((tb, out_pad), lambda i: (i, 0)),
        ),
        compiler_params=pltpu.CompilerParams(
            dimension_semantics=("parallel",),          # megacore-shardable
            vmem_limit_bytes=32 * 1024 * 1024,          # v7x-safe scoped cap
        ),
        cost_estimate=cost,
    )(x, W_fold, b_fold)

    # Lane-dense slab in the kernel; cheap slice back to the true out_dim here.
    return out_padded[:, :out_dim]


def simple_net_forward(x, params, *, tb_max=256):
    """Fused simpleNet forward: fold once (Pallas), then one matmul+bias kernel."""
    W_fold, b_fold, out_dim = prepare_params(params)
    return affine_forward(x, W_fold, b_fold, out_dim, tb_max=tb_max)


# ---------------------------------- init ------------------------------------- #
def init_params(key, in_dim, n_hidden_1, n_hidden_2, out_dim):
    """Deterministic init mimicking nn.Linear's U(-1/sqrt(fan_in), 1/sqrt(fan_in))."""
    ks = jax.random.split(key, 6)

    def linear(kw, kb, fan_in, fan_out):
        bound = 1.0 / jnp.sqrt(jnp.float32(fan_in))
        # stored as [in, out] (transpose of PyTorch layout)
        w = jax.random.uniform(kw, (fan_in, fan_out), jnp.float32, -bound, bound)
        b = jax.random.uniform(kb, (1, fan_out), jnp.float32, -bound, bound)
        return w, b

    w1, b1 = linear(ks[0], ks[1], in_dim, n_hidden_1)
    w2, b2 = linear(ks[2], ks[3], n_hidden_1, n_hidden_2)
    w3, b3 = linear(ks[4], ks[5], n_hidden_2, out_dim)
    return (w1, b1, w2, b2, w3, b3)


# ---------------------------------- demo -------------------------------------- #
if __name__ == "__main__":
    # Small shapes consistent with the module's forward (pure dense MLP).
    B, in_dim, n_hidden_1, n_hidden_2, out_dim = 8, 32, 64, 48, 16

    key = jax.random.PRNGKey(0)
    k_x, k_p = jax.random.split(key)
    x = jax.random.normal(k_x, (B, in_dim), jnp.float32)
    params = init_params(k_p, in_dim, n_hidden_1, n_hidden_2, out_dim)

    out = simple_net_forward(x, params)
    out = jax.block_until_ready(out)

    # Pure-JAX reference of the original (unfused) forward pass.
    w1, b1, w2, b2, w3, b3 = params
    ref = ((x @ w1 + b1) @ w2 + b2) @ w3 + b3
    assert out.shape == (B, out_dim)
    assert jnp.allclose(out, ref, atol=1e-4, rtol=1e-4), float(
        jnp.max(jnp.abs(out - ref)))

    print("KERNEL_OK")
</pallas_src>

<mosaic_0001>
module attributes {stable_mosaic.version = 11 : i64} {
  func.func @fold_kernel(%arg0: memref<32x128xf32, #tpu.memory_space<vmem>>, %arg1: memref<8x128xf32, #tpu.memory_space<vmem>>, %arg2: memref<128x128xf32, #tpu.memory_space<vmem>>, %arg3: memref<8x128xf32, #tpu.memory_space<vmem>>, %arg4: memref<128x128xf32, #tpu.memory_space<vmem>>, %arg5: memref<8x128xf32, #tpu.memory_space<vmem>>, %arg6: memref<32x128xf32, #tpu.memory_space<vmem>>, %arg7: memref<8x128xf32, #tpu.memory_space<vmem>>) attributes {dimension_semantics = [], scalar_prefetch = 0 : i64, scratch_operands = 0 : i64, tpu.core_type = #tpu.core_type<tc>} {
    %c0 = arith.constant 0 : index
    %c0_0 = arith.constant 0 : index
    %0 = vector.load %arg0[%c0, %c0_0] : memref<32x128xf32, #tpu.memory_space<vmem>>, vector<32x128xf32>
    %c0_1 = arith.constant 0 : index
    %c0_2 = arith.constant 0 : index
    %1 = vector.load %arg2[%c0_1, %c0_2] : memref<128x128xf32, #tpu.memory_space<vmem>>, vector<128x128xf32>
    %cst = arith.constant dense<0.000000e+00> : vector<32x128xf32>
    %2 = tpu.matmul %0, %1, %cst {dimension_numbers = #tpu.dot_dimension_numbers<[1], [0], [0], [1], [0, 0, 1, 1], [], []>} : vector<32x128xf32>, vector<128x128xf32>, vector<32x128xf32> -> vector<32x128xf32>
    %c0_3 = arith.constant 0 : index
    %c0_4 = arith.constant 0 : index
    %3 = vector.load %arg4[%c0_3, %c0_4] : memref<128x128xf32, #tpu.memory_space<vmem>>, vector<128x128xf32>
    %cst_5 = arith.constant dense<0.000000e+00> : vector<32x128xf32>
    %4 = tpu.matmul %2, %3, %cst_5 {dimension_numbers = #tpu.dot_dimension_numbers<[1], [0], [0], [1], [0, 0, 1, 1], [], []>} : vector<32x128xf32>, vector<128x128xf32>, vector<32x128xf32> -> vector<32x128xf32>
    %c0_6 = arith.constant 0 : index
    %c0_7 = arith.constant 0 : index
    %5 = vector.load %arg6[%c0_6, %c0_7] : memref<32x128xf32, #tpu.memory_space<vmem>>, vector<32x128xf32>
    tpu.vector_store %arg6[%c0_6, %c0_7], %4 {strides = array<i32>} : memref<32x128xf32, #tpu.memory_space<vmem>>, vector<32x128xf32>,
    %c0_8 = arith.constant 0 : index
    %c0_9 = arith.constant 0 : index
    %6 = vector.load %arg1[%c0_8, %c0_9] : memref<8x128xf32, #tpu.memory_space<vmem>>, vector<8x128xf32>
    %c0_10 = arith.constant 0 : index
    %c0_11 = arith.constant 0 : index
    %7 = vector.load %arg2[%c0_10, %c0_11] : memref<128x128xf32, #tpu.memory_space<vmem>>, vector<128x128xf32>
    %cst_12 = arith.constant dense<0.000000e+00> : vector<8x128xf32>
    %8 = tpu.matmul %6, %7, %cst_12 {dimension_numbers = #tpu.dot_dimension_numbers<[1], [0], [0], [1], [0, 0, 1, 1], [], []>} : vector<8x128xf32>, vector<128x128xf32>, vector<8x128xf32> -> vector<8x128xf32>
    %c0_13 = arith.constant 0 : index
    %c0_14 = arith.constant 0 : index
    %9 = vector.load %arg3[%c0_13, %c0_14] : memref<8x128xf32, #tpu.memory_space<vmem>>, vector<8x128xf32>
    %10 = arith.addf %8, %9 : vector<8x128xf32>
    %c0_15 = arith.constant 0 : index
    %c0_16 = arith.constant 0 : index
    %11 = vector.load %arg4[%c0_15, %c0_16] : memref<128x128xf32, #tpu.memory_space<vmem>>, vector<128x128xf32>
    %cst_17 = arith.constant dense<0.000000e+00> : vector<8x128xf32>
    %12 = tpu.matmul %10, %11, %cst_17 {dimension_numbers = #tpu.dot_dimension_numbers<[1], [0], [0], [1], [0, 0, 1, 1], [], []>} : vector<8x128xf32>, vector<128x128xf32>, vector<8x128xf32> -> vector<8x128xf32>
    %c0_18 = arith.constant 0 : index
    %c0_19 = arith.constant 0 : index
    %13 = vector.load %arg5[%c0_18, %c0_19] : memref<8x128xf32, #tpu.memory_space<vmem>>, vector<8x128xf32>
    %14 = arith.addf %12, %13 : vector<8x128xf32>
    %c0_20 = arith.constant 0 : index
    %c0_21 = arith.constant 0 : index
    %15 = vector.load %arg7[%c0_20, %c0_21] : memref<8x128xf32, #tpu.memory_space<vmem>>, vector<8x128xf32>
    tpu.vector_store %arg7[%c0_20, %c0_21], %14 {strides = array<i32>} : memref<8x128xf32, #tpu.memory_space<vmem>>, vector<8x128xf32>,
    return
  }
}

</mosaic_0001>

<bundles_post_ra>
// kernel: tpu_custom_call.1
= control target key start
LH: loop header
LB: loop body
LE: loop exit
PB: predicated region body
PF: predicated region fallthrough
CT: control target
= control target key end

     0   :  { %13 = vsyncpa [#allocation3], 0  ;;  %s1159_s0 = inlined_call_operand.hbm [shape: f32[32,128], index: 0, kind: input, shape index: {}]   ;;  %s1160_s1 = inlined_call_operand.hbm [shape: f32[8,128], index: 1, kind: input, shape index: {}]   ;;  %s1161_s2 = inlined_call_operand.hbm [shape: f32[128,128], index: 2, kind: input, shape index: {}]   ;;  %s1162_s3 = inlined_call_operand.hbm [shape: f32[8,128], index: 3, kind: input, shape index: {}]   ;;  %s1163_s4 = inlined_call_operand.hbm [shape: f32[128,128], index: 4, kind: input, shape index: {}]   ;;  %s1164_s5 = inlined_call_operand.vmem [shape: f32[8,128], index: 5, kind: input, shape index: {}]   ;;  %s1165_s6 = inlined_call_operand.hbm [shape: f32[32,128], index: 6, kind: output, shape index: {0}]   ;;  %s1166_s7 = inlined_call_operand.hbm [shape: f32[8,128], index: 7, kind: output, shape index: {1}]  }
   0x1   :  { %14 = vsyncpa [#allocation6], 0 }
   0x2   :  { %15 = vsyncpa [#allocation9], 0 }
   0x3   :  { %16 = vsyncpa [#allocation4], 0 }
   0x4   :  { %17 = vsyncpa [#allocation13], 0  ;;  %s891_s24 = smov [#allocation5]   ;;  %s892_s26 = smov [#allocation8]  }
   0x5   :  { %s36_s25 = sshll.u32 %s891_s24, 4  ;;  %s58_s27 = sshll.u32 %s892_s26, 4  ;;  %s37_s25 = int_to_ptr.vmem [resolvable:$true] %s36_s25  ;;  %s59_s27 = int_to_ptr.vmem [resolvable:$true] %s58_s27 }
   0x6   :  { %s749_s28 = scalar_lea.vmem %s37_s25, 128  ;;  %p754_p1 = scmp.lt.s32.totalorder %s37_s25, %s37_s25 }
   0x7   :  { %p750_p0 = scmp.ne.s32.totalorder %s37_s25, %s749_s28  ;;  %p755_p2 = scmp.lt.s32.totalorder %s749_s28, %s749_s28 }
   0x9   :  { %p756_p3 = por %p755_p2, %p754_p1 }
   0xb   :  { %p757_p4 = pnand %p756_p3, %p750_p0 }
   0xd   :  { %760 = shalt.err (!%p757_p4)
}
   0xe   :  { %39 = dma.hbm_to_vmem [thread:$0]  %s1160_s1, 128, %s37_s25, [#allocation6]  }
   0xf   :  { %s769_s8 = scalar_lea.vmem %s59_s27, 128  ;;  %p774_p6 = scmp.lt.s32.totalorder %s59_s27, %s59_s27 }
  0x10   :  { %p770_p5 = scmp.ne.s32.totalorder %s59_s27, %s769_s8  ;;  %p775_p7 = scmp.lt.s32.totalorder %s769_s8, %s769_s8 }
  0x12   :  { %p776_p8 = por %p775_p7, %p774_p6 }
  0x14   :  { %p777_p9 = pnand %p776_p8, %p770_p5 }
  0x16   :  { %780 = shalt.err (!%p777_p9)
}
  0x17   :  { %61 = dma.hbm_to_vmem [thread:$0]  %s1162_s3, 128, %s59_s27, [#allocation9]  }
  0x18   :  { %s893_s11 = smov [#allocation2]  }
  0x19   :  { %s23_s12 = sshll.u32 %s893_s11, 4  ;;  %s24_s12 = int_to_ptr.vmem [resolvable:$true] %s23_s12 }
  0x1a   :  { %s789_s13 = scalar_lea.vmem %s24_s12, 512  ;;  %p794_p11 = scmp.lt.s32.totalorder %s24_s12, %s24_s12 }
  0x1b   :  { %p790_p10 = scmp.ne.s32.totalorder %s24_s12, %s789_s13  ;;  %p795_p12 = scmp.lt.s32.totalorder %s789_s13, %s789_s13 }
  0x1d   :  { %p796_p13 = por %p795_p12, %p794_p11 }
  0x1f   :  { %p797_p0 = pnand %p796_p13, %p790_p10 }
  0x21   :  { %800 = shalt.err (!%p797_p0)
}
  0x22   :  { %s894_s1 = smov 128   ;;  %s895_s14 = smov 8  }
  0x23   :  { %29 = dma.hbm_to_vmem [thread:$0]  %s1159_s0, 512, %s24_s12, [#allocation3], %s894_s1, %s894_s1, %s895_s14  }
  0x24   :  { %s896_s3 = smov [#allocation7]   ;;  %s897_s18 = smov [#allocation10]  }
  0x25   :  { %s45_s17 = sshll.u32 %s896_s3, 4  ;;  %s67_s19 = sshll.u32 %s897_s18, 4  ;;  %s46_s17 = int_to_ptr.vmem [resolvable:$true] %s45_s17  ;;  %s68_s19 = int_to_ptr.vmem [resolvable:$true] %s67_s19 }
  0x26   :  { %s809_s20 = scalar_lea.vmem %s46_s17, 2048  ;;  %p814_p2 = scmp.lt.s32.totalorder %s46_s17, %s46_s17 }
  0x27   :  { %p810_p1 = scmp.ne.s32.totalorder %s46_s17, %s809_s20  ;;  %p815_p3 = scmp.lt.s32.totalorder %s809_s20, %s809_s20 }
  0x29   :  { %p816_p4 = por %p815_p3, %p814_p2 }
  0x2b   :  { %p817_p5 = pnand %p816_p4, %p810_p1 }
  0x2d   :  { %820 = shalt.err (!%p817_p5)
}
  0x2e   :  { %51 = dma.hbm_to_vmem [thread:$0]  %s1161_s2, 2048, %s46_s17, [#allocation6], %s894_s1, %s894_s1, %s895_s14  }
  0x2f   :  { %s829_s0 = scalar_lea.vmem %s68_s19, 2048  ;;  %p834_p7 = scmp.lt.s32.totalorder %s68_s19, %s68_s19 }
  0x30   :  { %p830_p6 = scmp.ne.s32.totalorder %s68_s19, %s829_s0  ;;  %p835_p8 = scmp.lt.s32.totalorder %s829_s0, %s829_s0 }
  0x32   :  { %p836_p9 = por %p835_p8, %p834_p7 }
  0x34   :  { %p837_p10 = pnand %p836_p9, %p830_p6 }
  0x36   :  { %840 = shalt.err (!%p837_p10)
}
  0x37   :  { %73 = dma.hbm_to_vmem [thread:$0]  %s1163_s4, 2048, %s68_s19, [#allocation9], %s894_s1, %s894_s1, %s895_s14  }
  0x38   :  { %881 = dma.done.wait [#allocation3], 512  }
  0x39   :  { %882 = vsyncadd [#allocation3], 4294966784 }
  0x3a   :  { %883 = dma.done.wait [#allocation6], 2176  }
  0x3b   :  { %884 = vsyncadd [#allocation6], 4294965120 }
  0x3c   :  { %885 = dma.done.wait [#allocation9], 2176  }
  0x3d   :  { %886 = vsyncadd [#allocation9], 4294965120  ;;  %v966_v0 = vld [vmem:[#allocation7 + $0x78] sm:$0xff]  ;;  %v968_v1 = vld [vmem:[#allocation7 + $0x70] sm:$0xff]  ;;  %v898_v32 = vmov 0.0   ;;  %vm899_vm0 = vmmov 0  }
  0x3e   :  { %584 = vmatprep.subr.mxu0 %v966_v0  ;;  %v972_v2 = vld [vmem:[#allocation7 + $0x68] sm:$0xff]  ;;  %v976_v3 = vld [vmem:[#allocation7 + $0x60] sm:$0xff]  ;;  %v91_v4 = vld [vmem:[#allocation2] sm:$0xff]  ;;  %s900_s2 = smov [#allocation11]  }
  0x3f   :  { %585 = vmatpush3.msra.mxu0 %v966_v0  ;;  %v980_v5 = vld [vmem:[#allocation7 + $0x58] sm:$0xff]  ;;  %616 = vmatprep.mubr.f32.mxu0 %v91_v4  ;;  %v983_v6 = vld [vmem:[#allocation10 + $0x78] sm:$0xff]  ;;  %v988_v8 = vld [vmem:[#allocation7 + $0x50] sm:$0xff]  ;;  %s482_s4 = sshll.u32 %s900_s2, 4  ;;  %s483_s4 = int_to_ptr.vmem [resolvable:$true] %s482_s4 }
  0x40   :  { %586 = vmatprep.subr.mxu0 %v968_v1  ;;  %v985_v7 = vld [vmem:[#allocation10 + $0x70] sm:$0xff]  ;;  %622 = vmatprep.subr.mxu1 %v983_v6  ;;  %v993_v9 = vld [vmem:[#allocation10 + $0x68] sm:$0xff]  ;;  %v996_v10 = vld [vmem:[#allocation7 + $0x48] sm:$0xff]  ;;  %s841_s25 = scalar_lea.vmem %s483_s4, 512  ;;  %p846_p12 = scmp.lt.s32.totalorder %s483_s4, %s483_s4 }
  0x41   :  { %587 = vmatpush3.msra.mxu0 %v968_v1  ;;  %623 = vmatpush3.msra.mxu1 %v983_v6  ;;  %v1001_v11 = vld [vmem:[#allocation10 + $0x60] sm:$0xff]  ;;  %v1004_v12 = vld [vmem:[#allocation7 + $0x40] sm:$0xff]  ;;  %v1012_v14 = vld [vmem:[#allocation7 + $0x38] sm:$0xff]  ;;  %p842_p11 = scmp.ne.s32.totalorder %s483_s4, %s841_s25  ;;  %p847_p13 = scmp.lt.s32.totalorder %s841_s25, %s841_s25 }
  0x42   :  { %588 = vmatprep.subr.mxu0 %v972_v2  ;;  %624 = vmatprep.subr.mxu1 %v985_v7  ;;  %v1009_v13 = vld [vmem:[#allocation10 + $0x58] sm:$0xff]  ;;  %v1017_v15 = vld [vmem:[#allocation10 + $0x50] sm:$0xff]  ;;  %v1020_v16 = vld [vmem:[#allocation7 + $0x30] sm:$0xff] }
  0x43   :  { %589 = vmatpush3.msra.mxu0 %v972_v2  ;;  %625 = vmatpush3.msra.mxu1 %v985_v7  ;;  %v1025_v17 = vld [vmem:[#allocation10 + $0x48] sm:$0xff]  ;;  %v1028_v18 = vld [vmem:[#allocation7 + $0x28] sm:$0xff]  ;;  %v1036_v20 = vld [vmem:[#allocation7 + $0x20] sm:$0xff]  ;;  %p848_p0 = por %p847_p13, %p846_p12 }
  0x44   :  { %590 = vmatprep.subr.mxu0 %v976_v3  ;;  %626 = vmatprep.subr.mxu1 %v993_v9  ;;  %v1033_v19 = vld [vmem:[#allocation10 + $0x40] sm:$0xff]  ;;  %v1041_v21 = vld [vmem:[#allocation10 + $0x38] sm:$0xff]  ;;  %v1044_v22 = vld [vmem:[#allocation7 + $0x18] sm:$0xff] }
  0x45   :  { %591 = vmatpush3.msra.mxu0 %v976_v3  ;;  %627 = vmatpush3.msra.mxu1 %v993_v9  ;;  %v1049_v23 = vld [vmem:[#allocation10 + $0x30] sm:$0xff]  ;;  %v1052_v24 = vld [vmem:[#allocation7 + $0x10] sm:$0xff]  ;;  %v96_v26 = vld [vmem:[#allocation7 + $0x8] sm:$0xff]  ;;  %p849_p1 = pnand %p848_p0, %p842_p11 }
  0x46   :  { %592 = vmatprep.subr.mxu0 %v980_v5  ;;  %628 = vmatprep.subr.mxu1 %v1001_v11  ;;  %v1057_v25 = vld [vmem:[#allocation10 + $0x28] sm:$0xff]  ;;  %v1063_v27 = vld [vmem:[#allocation10 + $0x20] sm:$0xff]  ;;  %v95_v28 = vld [vmem:[#allocation7] sm:$0xff] }
  0x47   :  { %593 = vmatpush3.msra.mxu0 %v980_v5  ;;  %629 = vmatpush3.msra.mxu1 %v1001_v11  ;;  %v1068_v29 = vld [vmem:[#allocation10 + $0x18] sm:$0xff]  ;;  %v93_v31 = vld [vmem:[#allocation2 + $0x10] sm:$0xff]  ;;  %v1074_v33 = vld [vmem:[#allocation10 + $0x10] sm:$0xff] }
  0x48   :  { %594 = vmatprep.subr.mxu0 %v988_v8  ;;  %630 = vmatprep.subr.mxu1 %v1009_v13  ;;  %v92_v30 = vld [vmem:[#allocation2 + $0x8] sm:$0xff]  ;;  %v94_v34 = vld [vmem:[#allocation2 + $0x18] sm:$0xff]  ;;  %v301_v36 = vld [vmem:[#allocation5] sm:$0xff] }
  0x49   :  { %595 = vmatpush3.msra.mxu0 %v988_v8  ;;  %631 = vmatpush3.msra.mxu1 %v1009_v13  ;;  %v1082_v35 = vld [vmem:[#allocation10 + $0x8] sm:$0xff]  ;;  %v196_v37 = vld [vmem:[#allocation10] sm:$0xff]  ;;  %v318_v42 = vld [vmem:[#allocation8] sm:$0xff] }
  0x4a   :  { %596 = vmatprep.subr.mxu0 %v996_v10  ;;  %632 = vmatprep.subr.mxu1 %v1017_v15 }
  0x4b   :  { %597 = vmatpush3.msra.mxu0 %v996_v10  ;;  %633 = vmatpush3.msra.mxu1 %v1017_v15 }
  0x4c   :  { %598 = vmatprep.subr.mxu0 %v1004_v12  ;;  %634 = vmatprep.subr.mxu1 %v1025_v17 }
  0x4d   :  { %599 = vmatpush3.msra.mxu0 %v1004_v12  ;;  %635 = vmatpush3.msra.mxu1 %v1025_v17 }
  0x4e   :  { %600 = vmatprep.subr.mxu0 %v1012_v14  ;;  %636 = vmatprep.subr.mxu1 %v1033_v19 }
  0x4f   :  { %601 = vmatpush3.msra.mxu0 %v1012_v14  ;;  %637 = vmatpush3.msra.mxu1 %v1033_v19 }
  0x50   :  { %602 = vmatprep.subr.mxu0 %v1020_v16  ;;  %638 = vmatprep.subr.mxu1 %v1041_v21 }
  0x51   :  { %603 = vmatpush3.msra.mxu0 %v1020_v16  ;;  %639 = vmatpush3.msra.mxu1 %v1041_v21 }
  0x52   :  { %604 = vmatprep.subr.mxu0 %v1028_v18  ;;  %640 = vmatprep.subr.mxu1 %v1049_v23 }
  0x53   :  { %605 = vmatpush3.msra.mxu0 %v1028_v18  ;;  %641 = vmatpush3.msra.mxu1 %v1049_v23 }
  0x54   :  { %606 = vmatprep.subr.mxu0 %v1036_v20  ;;  %642 = vmatprep.subr.mxu1 %v1057_v25 }
  0x55   :  { %607 = vmatpush3.msra.mxu0 %v1036_v20  ;;  %643 = vmatpush3.msra.mxu1 %v1057_v25 }
  0x56   :  { %608 = vmatprep.subr.mxu0 %v1044_v22  ;;  %644 = vmatprep.subr.mxu1 %v1063_v27 }
  0x57   :  { %609 = vmatpush3.msra.mxu0 %v1044_v22  ;;  %645 = vmatpush3.msra.mxu1 %v1063_v27 }
  0x58   :  { %610 = vmatprep.subr.mxu0 %v1052_v24  ;;  %646 = vmatprep.subr.mxu1 %v1068_v29 }
  0x59   :  { %611 = vmatpush3.msra.mxu0 %v1052_v24  ;;  %647 = vmatpush3.msra.mxu1 %v1068_v29 }
  0x5a   :  { %612 = vmatprep.subr.mxu0 %v96_v26  ;;  %648 = vmatprep.subr.mxu1 %v1074_v33 }
  0x5b   :  { %613 = vmatpush3.msra.mxu0 %v96_v26  ;;  %649 = vmatpush3.msra.mxu1 %v1074_v33 }
  0x5c   :  { %614 = vmatprep.subr.mxu0 %v95_v28  ;;  %650 = vmatprep.subr.mxu1 %v1082_v35 }
  0x5d   :  { %615 = vmatpush3.msra.mxu0 %v95_v28  ;;  %651 = vmatpush3.msra.mxu1 %v1082_v35 }
  0x5e   :  { %617 = vmatmul.mubr.f32.vlgmr.msra.gmra.mxu0 %v92_v30  ;;  %660 = vmatprep.subr.mxu0 %v898_v32 }
  0x5f   :  { %661 = vmatpush3.msra.mxu0 %v966_v0  ;;  %619 = vmatprep.mubr.f32.mxu0 %v93_v31 }
  0x60   :  { %662 = vmatprep.subr.mxu0 %v898_v32  ;;  %652 = vmatprep.subr.mxu1 %v196_v37 }
  0x61   :  { %663 = vmatpush3.msra.mxu0 %v968_v1  ;;  %653 = vmatpush3.msra.mxu1 %v196_v37 }
  0x62   :  { %664 = vmatprep.subr.mxu0 %v898_v32  ;;  %620 = vmatmul.mubr.f32.gmra.mxu0 %v94_v34 }
  0x63   :  { %665 = vmatpush3.msra.mxu0 %v972_v2  ;;  %692 = vmatprep.mubr.msk.f32.mxu0 %vm899_vm0, %v898_v32 }
  0x64   :  { %666 = vmatprep.subr.mxu0 %v898_v32  ;;  %695 = vmatprep.subr.mxu1 %v898_v32 }
  0x65   :  { %667 = vmatpush3.msra.mxu0 %v976_v3 }
  0x66   :  { %668 = vmatprep.subr.mxu0 %v898_v32 }
  0x67   :  { %669 = vmatpush3.msra.mxu0 %v980_v5 }
  0x68   :  { %670 = vmatprep.subr.mxu0 %v898_v32 }
  0x69   :  { %671 = vmatpush3.msra.mxu0 %v988_v8 }
  0x6a   :  { %672 = vmatprep.subr.mxu0 %v898_v32 }
  0x6b   :  { %673 = vmatpush3.msra.mxu0 %v996_v10 }
  0x6c   :  { %674 = vmatprep.subr.mxu0 %v898_v32 }
  0x6d   :  { %675 = vmatpush3.msra.mxu0 %v1004_v12 }
  0x6e   :  { %676 = vmatprep.subr.mxu0 %v898_v32 }
  0x6f   :  { %677 = vmatpush3.msra.mxu0 %v1012_v14 }
  0x70   :  { %678 = vmatprep.subr.mxu0 %v898_v32 }
  0x71   :  { %679 = vmatpush3.msra.mxu0 %v1020_v16 }
  0x72   :  { %680 = vmatprep.subr.mxu0 %v898_v32 }
  0x73   :  { %681 = vmatpush3.msra.mxu0 %v1028_v18 }
  0x74   :  { %682 = vmatprep.subr.mxu0 %v898_v32 }
  0x75   :  { %683 = vmatpush3.msra.mxu0 %v1036_v20 }
  0x76   :  { %684 = vmatprep.subr.mxu0 %v898_v32 }
  0x77   :  { %685 = vmatpush3.msra.mxu0 %v1044_v22 }
  0x78   :  { %686 = vmatprep.subr.mxu0 %v898_v32 }
  0x79   :  { %687 = vmatpush3.msra.mxu0 %v1052_v24 }
  0x7a   :  { %688 = vmatprep.subr.mxu0 %v898_v32 }
  0x7b   :  { %689 = vmatpush3.msra.mxu0 %v96_v26 }
  0x7c   :  { %690 = vmatprep.subr.mxu0 %v898_v32 }
  0x7d   :  { %691 = vmatpush3.msra.mxu0 %v95_v28 }
  0x7e   :  { %693 = vmatmul.mubr.f32.vlgmr.msra.gmra.mxu0 %v301_v36 }
 0x11e   :  { %v618_v38 = vpop.f32.mrf.mxu0 }
 0x120   :  { %v177_v39 = vpop.f32.mrf.mxu0 }
 0x121   :  { %654 = vmatprep.mubr.f32.mxu1 %v177_v39 }
 0x122   :  { %655 = vmatmul.mubr.f32.vlgmr.msra.gmra.mxu1 %v618_v38  ;;  %v621_v40 = vpop.f32.mrf.mxu0 }
 0x123   :  { %696 = vmatpush3.msra.mxu1 %v983_v6 }
 0x124   :  { %697 = vmatprep.subr.mxu1 %v898_v32  ;;  %v187_v41 = vpop.f32.mrf.mxu0 }
 0x125   :  { %698 = vmatpush3.msra.mxu1 %v985_v7  ;;  %657 = vmatprep.mubr.f32.mxu1 %v187_v41 }
 0x126   :  { %699 = vmatprep.subr.mxu1 %v898_v32  ;;  %658 = vmatmul.mubr.f32.gmra.mxu1 %v621_v40 }
 0x127   :  { %700 = vmatpush3.msra.mxu1 %v993_v9  ;;  %727 = vmatprep.mubr.msk.f32.mxu1 %vm899_vm0, %v898_v32 }
 0x128   :  { %701 = vmatprep.subr.mxu1 %v898_v32 }
 0x129   :  { %702 = vmatpush3.msra.mxu1 %v1001_v11 }
 0x12a   :  { %703 = vmatprep.subr.mxu1 %v898_v32 }
 0x12b   :  { %704 = vmatpush3.msra.mxu1 %v1009_v13 }
 0x12c   :  { %705 = vmatprep.subr.mxu1 %v898_v32 }
 0x12d   :  { %706 = vmatpush3.msra.mxu1 %v1017_v15 }
 0x12e   :  { %707 = vmatprep.subr.mxu1 %v898_v32 }
 0x12f   :  { %708 = vmatpush3.msra.mxu1 %v1025_v17 }
 0x130   :  { %709 = vmatprep.subr.mxu1 %v898_v32 }
 0x131   :  { %710 = vmatpush3.msra.mxu1 %v1033_v19 }
 0x132   :  { %711 = vmatprep.subr.mxu1 %v898_v32 }
 0x133   :  { %712 = vmatpush3.msra.mxu1 %v1041_v21 }
 0x134   :  { %713 = vmatprep.subr.mxu1 %v898_v32 }
 0x135   :  { %714 = vmatpush3.msra.mxu1 %v1049_v23 }
 0x136   :  { %715 = vmatprep.subr.mxu1 %v898_v32 }
 0x137   :  { %716 = vmatpush3.msra.mxu1 %v1057_v25 }
 0x138   :  { %717 = vmatprep.subr.mxu1 %v898_v32 }
 0x139   :  { %718 = vmatpush3.msra.mxu1 %v1063_v27 }
 0x13a   :  { %719 = vmatprep.subr.mxu1 %v898_v32 }
 0x13b   :  { %720 = vmatpush3.msra.mxu1 %v1068_v29 }
 0x13c   :  { %721 = vmatprep.subr.mxu1 %v898_v32 }
 0x13d   :  { %722 = vmatpush3.msra.mxu1 %v1074_v33 }
 0x13e   :  { %723 = vmatprep.subr.mxu1 %v898_v32  ;;  %v385_v43 = vpop.f32.mrf.mxu0 }
 0x13f   :  { %v386_v44 = vadd.f32 %v385_v43, %v318_v42  ;;  %724 = vmatpush3.msra.mxu1 %v1082_v35 }
 0x140   :  { %725 = vmatprep.subr.mxu1 %v898_v32  ;;  %v694_v45 = vpop.f32.mrf.mxu0 }
 0x141   :  { %726 = vmatpush3.msra.mxu1 %v196_v37 }
 0x142   :  { %728 = vmatmul.mubr.f32.vlgmr.msra.gmra.mxu1 %v386_v44 }
 0x1e2   :  { %v656_v46 = vpop.f32.mrf.mxu1 }
 0x1e3   :  { %298 = vst [vmem:[#allocation11 + $0x8] sm:$0xff] %v656_v46 }
 0x1e4   :  { %v278_v47 = vpop.f32.mrf.mxu1 }
 0x1e5   :  { %297 = vst [vmem:[#allocation11] sm:$0xff] %v278_v47 }
 0x1e6   :  { %v659_v48 = vpop.f32.mrf.mxu1 }
 0x1e7   :  { %300 = vst [vmem:[#allocation11 + $0x18] sm:$0xff] %v659_v48 }
 0x1e8   :  { %v288_v49 = vpop.f32.mrf.mxu1 }
 0x1e9   :  { %299 = vst [vmem:[#allocation11 + $0x10] sm:$0xff] %v288_v49 }
 0x1ea   :  { %852 = shalt.err (!%p849_p1)
}
 0x1eb   :  { %488 = dma.vmem_to_hbm [thread:$0]  %s483_s4, 512, %s1165_s6, [#allocation4], %s894_s1, %s894_s1, %s895_s14  }
 0x1ec   :  { %v405_v50 = vld [vmem:[%s1164_s5] sm:$0xff]  ;;  %s901_s30 = smov [#allocation12]  }
 0x1ed   :  { %s495_s8 = sshll.u32 %s901_s30, 4  ;;  %s496_s8 = int_to_ptr.vmem [resolvable:$true] %s495_s8 }
 0x1ee   :  { %s861_s9 = scalar_lea.vmem %s496_s8, 128  ;;  %p866_p3 = scmp.lt.s32.totalorder %s496_s8, %s496_s8 }
 0x1ef   :  { %p862_p2 = scmp.ne.s32.totalorder %s496_s8, %s861_s9  ;;  %p867_p4 = scmp.lt.s32.totalorder %s861_s9, %s861_s9 }
 0x1f1   :  { %p868_p5 = por %p867_p4, %p866_p3 }
 0x1f3   :  { %p869_p6 = pnand %p868_p5, %p862_p2 }
 0x202   :  { %v472_v51 = vpop.f32.mrf.mxu1 }
 0x203   :  { %v473_v52 = vadd.f32 %v472_v51, %v405_v50 }
 0x204   :  { %v729_v53 = vpop.f32.mrf.mxu1 }
 0x205   :  { %476 = vst [vmem:[#allocation12] sm:$0xff] %v473_v52 }
 0x206   :  { %872 = shalt.err (!%p869_p6)
}
 0x207   :  { %498 = dma.vmem_to_hbm [thread:$0]  %s496_s8, 128, %s1166_s7, [#allocation13]  }
 0x208   :  { %887 = dma.done.wait [#allocation4], 512  }
 0x209   :  { %888 = vsyncadd [#allocation4], 4294966784 }
 0x20a   :  { %889 = dma.done.wait [#allocation13], 128  }
 0x20b   :  { %890 = vsyncadd [#allocation13], 4294967168 }
 0x20c   :  { %505 = vsyncpa [#allocation3], 1 }
 0x20d   :  { %506 = vsyncpa [#allocation6], 1 }
 0x20e   :  { %507 = vsyncpa [#allocation9], 1 }
 0x20f   :  { %508 = vsyncpa [#allocation4], 1 }
 0x210   :  { %509 = vsyncpa [#allocation13], 1 }

</bundles_post_ra>
